<compile_context>
chip_gen: v5e
topology: v5e:2x2
jax: 0.10.0
libtpu: 0.0.40
codegen_flags: <defaults>
</compile_context>

<pallas_src>
import functools

import jax
import jax.numpy as jnp
from jax.experimental import pallas as pl
from jax.experimental.pallas import tpu as pltpu


def _round_up(v, m):
    return ((v + m - 1) // m) * m


def _device_kind():
    try:
        return jax.devices()[0].device_kind.lower()
    except Exception:  # defensive: never let detection break the forward pass
        return ""


def _is_v5e_or_v6(kind):
    return ("v5 lite" in kind) or ("v5e" in kind) or ("v6" in kind)


def _int8_mxu_ok():
    # int8 MXU path exists on v5e/v6e; v7x has no integer MXU mode -> bf16.
    return _is_v5e_or_v6(_device_kind())


def _vmem_limit_bytes():
    # 128 MiB physical VMEM on v5e/v6e -> allow large tiles / deep buffering;
    # stay <= 48 MiB elsewhere so we never exceed v7x's 64 MiB physical VMEM.
    return (96 if _is_v5e_or_v6(_device_kind()) else 48) * 1024 * 1024


# ----------------------------------------------------------------------------
# Kernel 1: binarized-conv matmul + fused per-tile BN partial sums.
#   p_ref : (tm, Kdim)  +/-1 patches (bf16 or int8)
#   w_ref : (Kdim, CP)  +/-1 weight signs (grid-invariant, resident)
#   acc_ref: (tm, CP)   f32 raw conv accumulator (scale/bias applied in pass 2)
#   s1/s2 : (1, 8, CP)  per-tile column sum / sum-of-squares (8 identical rows
#                       so the store stays (8,128)-tile aligned; parallel-safe
#                       because every grid step writes its own block).
# ----------------------------------------------------------------------------
def _bin_conv_stats_kernel(p_ref, w_ref, acc_ref, s1_ref, s2_ref):
    lhs = p_ref[...]
    rhs = w_ref[...]
    if jnp.issubdtype(lhs.dtype, jnp.integer):
        # v5e/v6e int8 MXU: products are +/-1/0, int32 accumulation is exact.
        acc = jnp.dot(lhs, rhs, preferred_element_type=jnp.int32)
        acc = acc.astype(jnp.float32)
    else:
        # bf16 +/-1 operands are exact; f32 MXU accumulation.
        acc = jnp.dot(lhs, rhs, preferred_element_type=jnp.float32)
    acc_ref[...] = acc
    col_sum = jnp.sum(acc, axis=0, keepdims=True)          # (1, CP)
    col_sq = jnp.sum(acc * acc, axis=0, keepdims=True)     # (1, CP)
    s1_ref[...] = jnp.broadcast_to(col_sum[None], s1_ref.shape)
    s2_ref[...] = jnp.broadcast_to(col_sq[None], s2_ref.shape)


# ----------------------------------------------------------------------------
# Kernel 2: fused per-channel affine (weight scale + conv bias + BatchNorm) and
# ReLU over the lane-dense (M, 128k) conv accumulator.  One read, one write.
# ----------------------------------------------------------------------------
def _affine_relu_kernel(y_ref, a_ref, b_ref, o_ref):
    o_ref[...] = jnp.maximum(y_ref[...] * a_ref[...] + b_ref[...], 0.0)


@functools.partial(
    jax.jit,
    static_argnames=("block_stride", "tm", "bn_eps", "use_int8",
                     "nhwc_in", "nhwc_out", "vmem_limit"))
def _forward_impl(x, w_full, conv_bias, bn_gamma, bn_beta, *,
                  block_stride, tm, bn_eps, use_int8, nhwc_in, nhwc_out,
                  vmem_limit):
    assert tm % 8 == 0
    if nhwc_in:
        N, H, W, C_in = x.shape
    else:
        N, C_in, H, W = x.shape
    c_out, cin_w, K, _ = w_full.shape
    assert cin_w == C_in and K == 3
    pad = 1  # XNORConvBNReLU hard-codes kernel=3, stride=1, padding=1

    op_dtype = jnp.int8 if use_int8 else jnp.bfloat16

    # --- weight binarization (xnor_binarize forward), hoisted out of kernel ---
    w_c = w_full - jnp.mean(w_full, axis=1, keepdims=True)
    w_c = jnp.clip(w_c, -1.0, 1.0)
    mean_val = jnp.mean(jnp.abs(w_c).reshape(c_out, -1), axis=1)      # (c_out,)
    w_sign = jnp.sign(w_c)                                            # +/-1 (0)

    # Pre-transposed (Kdim, c_out); feature order (kh, kw, c_in) matches patches.
    Kdim = K * K * C_in                    # NOT padded to 128 (full-dim blocks)
    CP = _round_up(c_out, 128)             # lane-dense output channels
    w_mat = jnp.transpose(w_sign, (2, 3, 1, 0)).reshape(Kdim, c_out)
    w_mat = jnp.pad(w_mat, ((0, 0), (0, CP - c_out))).astype(op_dtype)

    # --- input binarization + NHWC im2col -------------------------------------
    x_nhwc = x if nhwc_in else jnp.transpose(x, (0, 2, 3, 1))
    x_bin = jnp.sign(x_nhwc).astype(op_dtype)          # +/-1 exact in bf16/int8
    x_padded = jnp.pad(x_bin, ((0, 0), (pad, pad), (pad, pad), (0, 0)))
    Ho = H + 2 * pad - K + 1
    Wo = W + 2 * pad - K + 1
    cols = []
    for kh in range(K):
        for kw in range(K):
            cols.append(x_padded[:, kh:kh + Ho, kw:kw + Wo, :])  # (N,Ho,Wo,C_in)
    patches = jnp.stack(cols, axis=3)                  # (N, Ho, Wo, K*K, C_in)
    patches = patches.reshape(N * Ho * Wo, Kdim)

    M = N * Ho * Wo
    # Keep at least 2 M tiles so megacore (v7x) can split the "parallel" grid
    # across both TensorCores even for tiny demo inputs.
    tm1 = max(8, min(tm, _round_up(-(-M // 2), 8)))
    Mp = _round_up(M, tm1)
    patches = jnp.pad(patches, ((0, Mp - M), (0, 0)))
    grid1 = Mp // tm1

    mosaic = pltpu.CompilerParams(
        dimension_semantics=("parallel",),
        vmem_limit_bytes=vmem_limit,
    )

    # --- pass 1: conv matmul + fused per-tile BN partial sums -----------------
    acc, s1, s2 = pl.pallas_call(
        _bin_conv_stats_kernel,
        out_shape=(
            jax.ShapeDtypeStruct((Mp, CP), jnp.float32),
            jax.ShapeDtypeStruct((grid1, 8, CP), jnp.float32),
            jax.ShapeDtypeStruct((grid1, 8, CP), jnp.float32),
        ),
        grid_spec=pltpu.PrefetchScalarGridSpec(
            num_scalar_prefetch=0,
            grid=(grid1,),
            in_specs=[
                pl.BlockSpec((tm1, Kdim), lambda i: (i, 0)),   # patch tile stream
                pl.BlockSpec((Kdim, CP), lambda i: (0, 0)),    # weights, resident
            ],
            out_specs=[
                pl.BlockSpec((tm1, CP), lambda i: (i, 0)),
                pl.BlockSpec((1, 8, CP), lambda i: (i, 0, 0)),
                pl.BlockSpec((1, 8, CP), lambda i: (i, 0, 0)),
            ],
        ),
        compiler_params=mosaic,
    )(patches, w_mat)

    # --- fold weight scale + conv bias + training-mode BatchNorm --------------
    # Only the tiny (grid1, c_out) reduction of the fused partial sums remains
    # in jnp; padded rows/channels contribute exact zeros.
    col_sum = jnp.sum(s1[:, 0, :c_out], axis=0)
    col_sq = jnp.sum(s2[:, 0, :c_out], axis=0)
    mu_acc = col_sum / M                      # divide by real M, not Mp
    var_acc = col_sq / M - mu_acc * mu_acc    # safe: acc entries are bounded ints
    # conv output per channel: y = mean_val * acc + conv_bias
    mu_y = mean_val * mu_acc + conv_bias
    var_y = (mean_val ** 2) * var_acc
    a_bn = bn_gamma / jnp.sqrt(var_y + bn_eps)
    A = a_bn * mean_val                                  # multiplies acc
    B = a_bn * (conv_bias - mu_y) + bn_beta              # shift
    A_p = jnp.pad(A, (0, CP - c_out)).reshape(1, CP).astype(jnp.float32)
    B_p = jnp.pad(B, (0, CP - c_out)).reshape(1, CP).astype(jnp.float32)

    # --- pass 2: fused affine + ReLU; single read of the accumulator ----------
    # Pure HBM-bound VPU work -> allow a larger row tile than pass 1 when it
    # divides Mp and still leaves >=2 tiles for megacore.
    tm2 = tm1
    for mult in (8, 4, 2):
        if grid1 % mult == 0 and grid1 // mult >= 2 and tm1 * mult <= 2048:
            tm2 = tm1 * mult
            break
    grid2 = Mp // tm2

    y_bn = pl.pallas_call(
        _affine_relu_kernel,
        out_shape=jax.ShapeDtypeStruct((Mp, CP), jnp.float32),
        grid_spec=pltpu.PrefetchScalarGridSpec(
            num_scalar_prefetch=0,
            grid=(grid2,),
            in_specs=[
                pl.BlockSpec((tm2, CP), lambda i: (i, 0)),
                pl.BlockSpec((1, CP), lambda i: (0, 0)),
                pl.BlockSpec((1, CP), lambda i: (0, 0)),
            ],
            out_specs=pl.BlockSpec((tm2, CP), lambda i: (i, 0)),
        ),
        compiler_params=mosaic,
    )(acc, A_p, B_p)

    y = y_bn[:M, :c_out].reshape(N, Ho, Wo, c_out)

    # BinaryVggBlock pool: MaxPool2d(2,2) if stride == 2 else Identity.
    # Pool in NHWC *before* any NCHW transpose (4x less transpose traffic).
    if block_stride == 2:
        y = y.reshape(N, Ho // 2, 2, Wo // 2, 2, c_out).max(axis=(2, 4))
    if not nhwc_out:
        y = jnp.transpose(y, (0, 3, 1, 2))
    return y


def binary_vgg_block_forward(x, w_full, conv_bias, bn_gamma, bn_beta, *,
                             block_stride=1, tm=512, bn_eps=1e-4,
                             use_int8=None, nhwc_in=False, nhwc_out=False):
    """x: (N, C_in, H, W) NCHW (or NHWC with nhwc_in=True).
    w_full: (c_out, C_in, 3, 3) OIHW.  Returns NCHW (NHWC with nhwc_out=True)."""
    if use_int8 is None:
        use_int8 = _int8_mxu_ok()
    return _forward_impl(
        x, w_full, conv_bias, bn_gamma, bn_beta,
        block_stride=int(block_stride), tm=int(tm), bn_eps=float(bn_eps),
        use_int8=bool(use_int8), nhwc_in=bool(nhwc_in),
        nhwc_out=bool(nhwc_out), vmem_limit=_vmem_limit_bytes())


# ----------------------------------------------------------------------------
# Pure-JAX reference of the module forward (value semantics), for verification.
# ----------------------------------------------------------------------------
def _reference_forward(x, w_full, conv_bias, gamma, beta, block_stride, eps=1e-4):
    c_out = w_full.shape[0]
    w_c = jnp.clip(w_full - jnp.mean(w_full, axis=1, keepdims=True), -1.0, 1.0)
    mean_val = jnp.mean(jnp.abs(w_c).reshape(c_out, -1), axis=1)
    w_bin = jnp.sign(w_c) * mean_val[:, None, None, None]
    x_bin = jnp.sign(x)
    y = jax.lax.conv_general_dilated(
        x_bin, w_bin, window_strides=(1, 1),
        padding=((1, 1), (1, 1)),
        dimension_numbers=("NCHW", "OIHW", "NCHW"))
    y = y + conv_bias[None, :, None, None]
    mu = jnp.mean(y, axis=(0, 2, 3))
    var = jnp.mean((y - mu[None, :, None, None]) ** 2, axis=(0, 2, 3))
    y = (gamma[None, :, None, None] * (y - mu[None, :, None, None])
         / jnp.sqrt(var[None, :, None, None] + eps) + beta[None, :, None, None])
    y = jnp.maximum(y, 0.0)
    if block_stride == 2:
        n, c, h, w = y.shape
        y = y.reshape(n, c, h // 2, 2, w // 2, 2).max(axis=(3, 5))
    return y


if __name__ == "__main__":
    key = jax.random.PRNGKey(0)
    kw, kb, kg, kbe, kx1, kx2 = jax.random.split(key, 6)

    C_in, c_out, K = 4, 8, 3
    # Module init: full_precision ~ N(0, 0.05); bias/gamma/beta given small
    # non-trivial values so the fused affine path is actually exercised.
    w_full = jax.random.normal(kw, (c_out, C_in, K, K), dtype=jnp.float32) * 0.05
    conv_bias = jax.random.normal(kb, (c_out,), dtype=jnp.float32) * 0.1
    bn_gamma = 1.0 + jax.random.normal(kg, (c_out,), dtype=jnp.float32) * 0.1
    bn_beta = jax.random.normal(kbe, (c_out,), dtype=jnp.float32) * 0.1

    configs = [
        (jax.random.normal(kx1, (2, C_in, 16, 16), dtype=jnp.float32), 1),
        (jax.random.normal(kx2, (2, C_in, 14, 14), dtype=jnp.float32), 2),
    ]

    for x, blk_stride in configs:
        y = binary_vgg_block_forward(x, w_full, conv_bias, bn_gamma, bn_beta,
                                     block_stride=blk_stride)
        y = jax.block_until_ready(y)
        y_ref = _reference_forward(x, w_full, conv_bias, bn_gamma, bn_beta,
                                   blk_stride)
        assert y.shape == y_ref.shape, (y.shape, y_ref.shape)
        max_err = float(jnp.max(jnp.abs(y - y_ref)))
        assert jnp.allclose(y, y_ref, atol=2e-4, rtol=2e-4), max_err

    # NHWC end-to-end path (drops both layout transposes when chaining blocks).
    x0, _ = configs[0]
    y_ref0 = _reference_forward(x0, w_full, conv_bias, bn_gamma, bn_beta, 1)
    y_nhwc = binary_vgg_block_forward(
        jnp.transpose(x0, (0, 2, 3, 1)), w_full, conv_bias, bn_gamma, bn_beta,
        block_stride=1, nhwc_in=True, nhwc_out=True)
    y_nhwc = jax.block_until_ready(y_nhwc)
    y_nhwc_nchw = jnp.transpose(y_nhwc, (0, 3, 1, 2))
    max_err = float(jnp.max(jnp.abs(y_nhwc_nchw - y_ref0)))
    assert jnp.allclose(y_nhwc_nchw, y_ref0, atol=2e-4, rtol=2e-4), max_err

    print("KERNEL_OK")
</pallas_src>

<mosaic_0001>
module attributes {stable_mosaic.version = 11 : i64} {
  func.func @_bin_conv_stats_kernel(%arg0: i32, %arg1: memref<256x36xbf16, #tpu.memory_space<vmem>>, %arg2: memref<36x128xbf16, #tpu.memory_space<vmem>>, %arg3: memref<256x128xf32, #tpu.memory_space<vmem>>, %arg4: memref<1x8x128xf32, #tpu.memory_space<vmem>>, %arg5: memref<1x8x128xf32, #tpu.memory_space<vmem>>) attributes {dimension_semantics = [#tpu.dimension_semantics<parallel>], iteration_bounds = array<i64: 2>, scalar_prefetch = 0 : i64, scratch_operands = 0 : i64, tpu.core_type = #tpu.core_type<tc>, window_params = [{transform_indices = @transform_0, window_bounds = array<i64: 256, 36>}, {pipeline_mode = #tpu.pipeline_mode<synchronous>, transform_indices = @transform_1, window_bounds = array<i64: 36, 128>}, {transform_indices = @transform_2, window_bounds = array<i64: 256, 128>}, {transform_indices = @transform_3, window_bounds = array<i64: 1, 8, 128>}, {transform_indices = @transform_4, window_bounds = array<i64: 1, 8, 128>}]} {
    %c0 = arith.constant 0 : index
    %c0_0 = arith.constant 0 : index
    %0 = vector.load %arg1[%c0, %c0_0] : memref<256x36xbf16, #tpu.memory_space<vmem>>, vector<256x36xbf16>
    %c0_1 = arith.constant 0 : index
    %c0_2 = arith.constant 0 : index
    %1 = vector.load %arg2[%c0_1, %c0_2] : memref<36x128xbf16, #tpu.memory_space<vmem>>, vector<36x128xbf16>
    %cst = arith.constant dense<0.000000e+00> : vector<256x128xf32>
    %2 = tpu.matmul %0, %1, %cst {dimension_numbers = #tpu.dot_dimension_numbers<[1], [0], [0], [1], [0, 0, 1, 1], [], []>} : vector<256x36xbf16>, vector<36x128xbf16>, vector<256x128xf32> -> vector<256x128xf32>
    %c0_3 = arith.constant 0 : index
    %c0_4 = arith.constant 0 : index
    %3 = vector.load %arg3[%c0_3, %c0_4] : memref<256x128xf32, #tpu.memory_space<vmem>>, vector<256x128xf32>
    tpu.vector_store %arg3[%c0_3, %c0_4], %2 {strides = array<i32>} : memref<256x128xf32, #tpu.memory_space<vmem>>, vector<256x128xf32>,
    %cst_5 = arith.constant dense<0.000000e+00> : vector<128xf32>
    %4 = vector.multi_reduction <add>, %2, %cst_5 [0] : vector<256x128xf32> to vector<128xf32>
    %5 = vector.shape_cast %4 : vector<128xf32> to vector<1x128xf32>
    %6 = arith.mulf %2, %2 : vector<256x128xf32>
    %cst_6 = arith.constant dense<0.000000e+00> : vector<128xf32>
    %7 = vector.multi_reduction <add>, %6, %cst_6 [0] : vector<256x128xf32> to vector<128xf32>
    %8 = vector.shape_cast %7 : vector<128xf32> to vector<1x128xf32>
    %9 = vector.shape_cast %5 : vector<1x128xf32> to vector<1x1x128xf32>
    %10 = vector.shape_cast %9 : vector<1x1x128xf32> to vector<1x1x128xf32>
    %11 = vector.broadcast %10 : vector<1x1x128xf32> to vector<1x8x128xf32>
    %c0_7 = arith.constant 0 : index
    %c0_8 = arith.constant 0 : index
    %c0_9 = arith.constant 0 : index
    %12 = vector.load %arg4[%c0_7, %c0_8, %c0_9] : memref<1x8x128xf32, #tpu.memory_space<vmem>>, vector<1x8x128xf32>
    tpu.vector_store %arg4[%c0_7, %c0_8, %c0_9], %11 {strides = array<i32>} : memref<1x8x128xf32, #tpu.memory_space<vmem>>, vector<1x8x128xf32>,
    %13 = vector.shape_cast %8 : vector<1x128xf32> to vector<1x1x128xf32>
    %14 = vector.shape_cast %13 : vector<1x1x128xf32> to vector<1x1x128xf32>
    %15 = vector.broadcast %14 : vector<1x1x128xf32> to vector<1x8x128xf32>
    %c0_10 = arith.constant 0 : index
    %c0_11 = arith.constant 0 : index
    %c0_12 = arith.constant 0 : index
    %16 = vector.load %arg5[%c0_10, %c0_11, %c0_12] : memref<1x8x128xf32, #tpu.memory_space<vmem>>, vector<1x8x128xf32>
    tpu.vector_store %arg5[%c0_10, %c0_11, %c0_12], %15 {strides = array<i32>} : memref<1x8x128xf32, #tpu.memory_space<vmem>>, vector<1x8x128xf32>,
    return
  }
  func.func @transform_0(%arg0: i32) -> (i32, i32) {
    %c0_i32 = arith.constant 0 : i32
    %c0_i32_0 = arith.constant 0 : i32
    return %arg0, %c0_i32 : i32, i32
  }
  func.func @transform_1(%arg0: i32) -> (i32, i32) {
    %c0_i32 = arith.constant 0 : i32
    %c0_i32_0 = arith.constant 0 : i32
    %c0_i32_1 = arith.constant 0 : i32
    return %c0_i32, %c0_i32_0 : i32, i32
  }
  func.func @transform_2(%arg0: i32) -> (i32, i32) {
    %c0_i32 = arith.constant 0 : i32
    %c0_i32_0 = arith.constant 0 : i32
    return %arg0, %c0_i32 : i32, i32
  }
  func.func @transform_3(%arg0: i32) -> (i32, i32, i32) {
    %c0_i32 = arith.constant 0 : i32
    %c0_i32_0 = arith.constant 0 : i32
    %c0_i32_1 = arith.constant 0 : i32
    return %arg0, %c0_i32, %c0_i32_0 : i32, i32, i32
  }
  func.func @transform_4(%arg0: i32) -> (i32, i32, i32) {
    %c0_i32 = arith.constant 0 : i32
    %c0_i32_0 = arith.constant 0 : i32
    %c0_i32_1 = arith.constant 0 : i32
    return %arg0, %c0_i32, %c0_i32_0 : i32, i32, i32
  }
}

module attributes {stable_mosaic.version = 11 : i64} {
  func.func @_affine_relu_kernel(%arg0: i32, %arg1: memref<256x128xf32, #tpu.memory_space<vmem>>, %arg2: memref<1x128xf32, #tpu.memory_space<vmem>>, %arg3: memref<1x128xf32, #tpu.memory_space<vmem>>, %arg4: memref<256x128xf32, #tpu.memory_space<vmem>>) attributes {dimension_semantics = [#tpu.dimension_semantics<parallel>], iteration_bounds = array<i64: 2>, scalar_prefetch = 0 : i64, scratch_operands = 0 : i64, tpu.core_type = #tpu.core_type<tc>, window_params = [{transform_indices = @transform_0, window_bounds = array<i64: 256, 128>}, {pipeline_mode = #tpu.pipeline_mode<synchronous>, transform_indices = @transform_1, window_bounds = array<i64: 1, 128>}, {pipeline_mode = #tpu.pipeline_mode<synchronous>, transform_indices = @transform_2, window_bounds = array<i64: 1, 128>}, {transform_indices = @transform_3, window_bounds = array<i64: 256, 128>}]} {
    %c0 = arith.constant 0 : index
    %c0_0 = arith.constant 0 : index
    %0 = vector.load %arg1[%c0, %c0_0] : memref<256x128xf32, #tpu.memory_space<vmem>>, vector<256x128xf32>
    %c0_1 = arith.constant 0 : index
    %c0_2 = arith.constant 0 : index
    %1 = vector.load %arg2[%c0_1, %c0_2] : memref<1x128xf32, #tpu.memory_space<vmem>>, vector<1x128xf32>
    %2 = vector.broadcast %1 : vector<1x128xf32> to vector<256x128xf32>
    %3 = arith.mulf %0, %2 : vector<256x128xf32>
    %c0_3 = arith.constant 0 : index
    %c0_4 = arith.constant 0 : index
    %4 = vector.load %arg3[%c0_3, %c0_4] : memref<1x128xf32, #tpu.memory_space<vmem>>, vector<1x128xf32>
    %5 = vector.broadcast %4 : vector<1x128xf32> to vector<256x128xf32>
    %6 = arith.addf %3, %5 : vector<256x128xf32>
    %cst = arith.constant 0.000000e+00 : f32
    %7 = vector.broadcast %cst : f32 to vector<256x128xf32>
    %8 = arith.maximumf %6, %7 : vector<256x128xf32>
    %c0_5 = arith.constant 0 : index
    %c0_6 = arith.constant 0 : index
    %9 = vector.load %arg4[%c0_5, %c0_6] : memref<256x128xf32, #tpu.memory_space<vmem>>, vector<256x128xf32>
    tpu.vector_store %arg4[%c0_5, %c0_6], %8 {strides = array<i32>} : memref<256x128xf32, #tpu.memory_space<vmem>>, vector<256x128xf32>,
    return
  }
  func.func @transform_0(%arg0: i32) -> (i32, i32) {
    %c0_i32 = arith.constant 0 : i32
    %c0_i32_0 = arith.constant 0 : i32
    return %arg0, %c0_i32 : i32, i32
  }
  func.func @transform_1(%arg0: i32) -> (i32, i32) {
    %c0_i32 = arith.constant 0 : i32
    %c0_i32_0 = arith.constant 0 : i32
    %c0_i32_1 = arith.constant 0 : i32
    return %c0_i32, %c0_i32_0 : i32, i32
  }
  func.func @transform_2(%arg0: i32) -> (i32, i32) {
    %c0_i32 = arith.constant 0 : i32
    %c0_i32_0 = arith.constant 0 : i32
    %c0_i32_1 = arith.constant 0 : i32
    return %c0_i32, %c0_i32_0 : i32, i32
  }
  func.func @transform_3(%arg0: i32) -> (i32, i32) {
    %c0_i32 = arith.constant 0 : i32
    %c0_i32_0 = arith.constant 0 : i32
    return %arg0, %c0_i32 : i32, i32
  }
}

</mosaic_0001>

<bundles_post_ra>
// kernel: _forward_impl.3
= control target key start
LH: loop header
LB: loop body
LE: loop exit
PB: predicated region body
PF: predicated region fallthrough
CT: control target
= control target key end

     0   :  { %s447_s12 = smov 0   ;;  %s606_s0 = inlined_call_operand.vmem [shape: f32[512,128], index: 0, kind: input, shape index: {}]   ;;  %s607_s1 = inlined_call_operand.vmem [shape: f32[1,128], index: 1, kind: input, shape index: {}]   ;;  %s608_s2 = inlined_call_operand.vmem [shape: f32[1,128], index: 2, kind: input, shape index: {}]   ;;  %s609_s3 = inlined_call_operand.vmem [shape: f32[512,128], index: 3, kind: output, shape index: {}]  }
   0x1 LB: > { %s398_s13 = sadd.s32 4294967295, %s425_s12   ;;  %p402_p0 = scmp.ge.s32.totalorder %s425_s12, 1  ;;  %s425_s12 = sphi %s447_s12, %s13_s12  }
   0x2   : > { %p138_p1 = scmp.lt.s32.totalorder %s425_s12, 3 }
   0x4   : > { %p139_p2 = pnand %p402_p0, %p138_p1 }
   0x5   : > { %s403_s14 = sshll.u32 (!%p139_p2), %s398_s13, 5 }
   0x6   : > { %142 = sbr.rel (%p139_p2) target bundleno = 53 (0x35), region = 32  ;;  %p163_p3 = scmp.lt.s32.totalorder (!%p139_p2), %s403_s14, 63 }
   0xb   : > { %s611_s14 = smov (!%p163_p3, %s403_s14), 63  ;;  %v458_v0 = vld [vmem:[%s607_s1] ss:$0 sm:$0xff] }
   0xc   : > { %s404_s17 = sshll.u32 %s611_s14, 3  ;;  %v468_v1 = vld [vmem:[%s608_s2] ss:$0 sm:$0xff] }
   0xd   : > { %s463_s20 = scalar_lea.vmem %s606_s0, %s404_s17  ;;  %s491_s25 = scalar_lea.vmem %s609_s3, %s404_s17 }
   0xe   : > { %v174_v2 = vld [vmem:[%s463_s20] sm:$0xff]  ;;  %v175_v3 = vld [vmem:[%s463_s20 + $0x8] sm:$0xff]  ;;  %v176_v4 = vld [vmem:[%s463_s20 + $0x10] sm:$0xff] }
   0xf   : > { %v210_v5 = vmul.f32 %v458_v0, %v174_v2  ;;  %v211_v6 = vmul.f32 %v458_v0, %v175_v3  ;;  %v212_v7 = vmul.f32 %v458_v0, %v176_v4  ;;  %v177_v8 = vld [vmem:[%s463_s20 + $0x18] sm:$0xff]  ;;  %v178_v9 = vld [vmem:[%s463_s20 + $0x20] sm:$0xff]  ;;  %v179_v10 = vld [vmem:[%s463_s20 + $0x28] sm:$0xff] }
  0x10   : > { %v213_v11 = vmul.f32 %v458_v0, %v177_v8  ;;  %v214_v12 = vmul.f32 %v458_v0, %v178_v9  ;;  %v215_v13 = vmul.f32 %v458_v0, %v179_v10  ;;  %v180_v14 = vld [vmem:[%s463_s20 + $0x30] sm:$0xff]  ;;  %v181_v15 = vld [vmem:[%s463_s20 + $0x38] sm:$0xff]  ;;  %v182_v24 = vld [vmem:[%s463_s20 + $0x40] sm:$0xff] }
  0x11   : > { %v246_v16 = vadd.f32 %v468_v1, %v210_v5  ;;  %v247_v17 = vadd.f32 %v468_v1, %v211_v6  ;;  %v248_v18 = vadd.f32 %v468_v1, %v212_v7  ;;  %v216_v19 = vmul.f32 %v458_v0, %v180_v14  ;;  %v183_v25 = vld [vmem:[%s463_s20 + $0x48] sm:$0xff]  ;;  %v184_v26 = vld [vmem:[%s463_s20 + $0x50] sm:$0xff]  ;;  %v185_v31 = vld [vmem:[%s463_s20 + $0x58] sm:$0xff] }
  0x12   : > { %v249_v20 = vadd.f32 %v468_v1, %v213_v11  ;;  %v250_v21 = vadd.f32 %v468_v1, %v214_v12  ;;  %v251_v22 = vadd.f32 %v468_v1, %v215_v13  ;;  %v217_v23 = vmul.f32 %v458_v0, %v181_v15  ;;  %v186_v32 = vld [vmem:[%s463_s20 + $0x60] sm:$0xff]  ;;  %v187_v33 = vld [vmem:[%s463_s20 + $0x68] sm:$0xff]  ;;  %v188_v37 = vld [vmem:[%s463_s20 + $0x70] sm:$0xff] }
  0x13   : > { %v278_v27 = vmax.f32 %v246_v16, 0.0  ;;  %v279_v28 = vmax.f32 %v247_v17, 0.0  ;;  %v280_v29 = vmax.f32 %v248_v18, 0.0  ;;  %v252_v30 = vadd.f32 %v468_v1, %v216_v19  ;;  %v189_v42 = vld [vmem:[%s463_s20 + $0x78] sm:$0xff]  ;;  %v190_v54 = vld [vmem:[%s463_s20 + $0x80] sm:$0xff]  ;;  %v191_v55 = vld [vmem:[%s463_s20 + $0x88] sm:$0xff] }
  0x14   : > { %v281_v34 = vmax.f32 %v249_v20, 0.0  ;;  %v282_v35 = vmax.f32 %v250_v21, 0.0  ;;  %v253_v36 = vadd.f32 %v468_v1, %v217_v23  ;;  %v283_v38 = vmax.f32 %v251_v22, 0.0  ;;  %v192_v56 = vld [vmem:[%s463_s20 + $0x90] sm:$0xff]  ;;  %v193_v59 = vld [vmem:[%s463_s20 + $0x98] sm:$0xff]  ;;  %v194_v63 = vld [vmem:[%s463_s20 + $0xa0] sm:$0xff] }
  0x15   : > { %310 = vst [vmem:[%s491_s25] sm:$0xff] %v278_v27  ;;  %v218_v39 = vmul.f32 %v458_v0, %v182_v24  ;;  %v219_v40 = vmul.f32 %v458_v0, %v183_v25  ;;  %v220_v41 = vmul.f32 %v458_v0, %v184_v26  ;;  %v284_v43 = vmax.f32 %v252_v30, 0.0  ;;  %v195_v6 = vld [vmem:[%s463_s20 + $0xa8] sm:$0xff]  ;;  %v196_v10 = vld [vmem:[%s463_s20 + $0xb0] sm:$0xff]  ;;  %v197_v14 = vld [vmem:[%s463_s20 + $0xb8] sm:$0xff] }
  0x16   : > { %311 = vst [vmem:[%s491_s25 + $0x8] sm:$0xff] %v279_v28  ;;  %v221_v44 = vmul.f32 %v458_v0, %v185_v31  ;;  %v222_v45 = vmul.f32 %v458_v0, %v186_v32  ;;  %v223_v46 = vmul.f32 %v458_v0, %v187_v33  ;;  %v224_v50 = vmul.f32 %v458_v0, %v188_v37  ;;  %v198_v18 = vld [vmem:[%s463_s20 + $0xc0] sm:$0xff]  ;;  %v199_v22 = vld [vmem:[%s463_s20 + $0xc8] sm:$0xff]  ;;  %v200_v26 = vld [vmem:[%s463_s20 + $0xd0] sm:$0xff] }
  0x17   : > { %312 = vst [vmem:[%s491_s25 + $0x10] sm:$0xff] %v280_v29  ;;  %v254_v47 = vadd.f32 %v468_v1, %v218_v39  ;;  %v255_v48 = vadd.f32 %v468_v1, %v219_v40  ;;  %v256_v49 = vadd.f32 %v468_v1, %v220_v41  ;;  %v285_v51 = vmax.f32 %v253_v36, 0.0  ;;  %v201_v30 = vld [vmem:[%s463_s20 + $0xd8] sm:$0xff] }
  0x18   : > { %313 = vst [vmem:[%s491_s25 + $0x18] sm:$0xff] %v281_v34  ;;  %v257_v52 = vadd.f32 %v468_v1, %v221_v44  ;;  %v225_v53 = vmul.f32 %v458_v0, %v189_v42  ;;  %v258_v58 = vadd.f32 %v468_v1, %v222_v45  ;;  %v259_v62 = vadd.f32 %v468_v1, %v223_v46  ;;  %v202_v34 = vld [vmem:[%s463_s20 + $0xe0] sm:$0xff]  ;;  %v204_v42 = vld [vmem:[%s463_s20 + $0xf0] sm:$0xff]  ;;  %v205_v46 = vld [vmem:[%s463_s20 + $0xf8] sm:$0xff] }
  0x19   : > { %314 = vst [vmem:[%s491_s25 + $0x20] sm:$0xff] %v282_v35  ;;  %v286_v57 = vmax.f32 %v254_v47, 0.0  ;;  %v287_v60 = vmax.f32 %v255_v48, 0.0  ;;  %v288_v61 = vmax.f32 %v256_v49, 0.0  ;;  %v260_v2 = vadd.f32 %v468_v1, %v224_v50 }
  0x1a   : > { %315 = vst [vmem:[%s491_s25 + $0x28] sm:$0xff] %v283_v38  ;;  %v226_v3 = vmul.f32 %v458_v0, %v190_v54  ;;  %v227_v4 = vmul.f32 %v458_v0, %v191_v55  ;;  %v228_v5 = vmul.f32 %v458_v0, %v192_v56  ;;  %v289_v7 = vmax.f32 %v257_v52, 0.0  ;;  %v203_v38 = vld [vmem:[%s463_s20 + $0xe8] sm:$0xff] }
  0x1b   : > { %316 = vst [vmem:[%s491_s25 + $0x30] sm:$0xff] %v284_v43  ;;  %v261_v8 = vadd.f32 %v468_v1, %v225_v53  ;;  %v229_v9 = vmul.f32 %v458_v0, %v193_v59  ;;  %v290_v11 = vmax.f32 %v258_v58, 0.0  ;;  %v230_v13 = vmul.f32 %v458_v0, %v194_v63 }
  0x1c   : > { %317 = vst [vmem:[%s491_s25 + $0x38] sm:$0xff] %v285_v51  ;;  %v262_v12 = vadd.f32 %v468_v1, %v226_v3  ;;  %v291_v15 = vmax.f32 %v259_v62, 0.0  ;;  %v263_v16 = vadd.f32 %v468_v1, %v227_v4  ;;  %v231_v17 = vmul.f32 %v458_v0, %v195_v6 }
  0x1d   : > { %318 = vst [vmem:[%s491_s25 + $0x40] sm:$0xff] %v286_v57  ;;  %v292_v19 = vmax.f32 %v260_v2, 0.0  ;;  %v264_v20 = vadd.f32 %v468_v1, %v228_v5  ;;  %v232_v21 = vmul.f32 %v458_v0, %v196_v10  ;;  %v293_v23 = vmax.f32 %v261_v8, 0.0 }
  0x1e   : > { %319 = vst [vmem:[%s491_s25 + $0x48] sm:$0xff] %v287_v60  ;;  %v265_v24 = vadd.f32 %v468_v1, %v229_v9  ;;  %v233_v25 = vmul.f32 %v458_v0, %v197_v14  ;;  %v294_v27 = vmax.f32 %v262_v12, 0.0  ;;  %v266_v28 = vadd.f32 %v468_v1, %v230_v13 }
  0x1f   : > { %320 = vst [vmem:[%s491_s25 + $0x50] sm:$0xff] %v288_v61  ;;  %v234_v29 = vmul.f32 %v458_v0, %v198_v18  ;;  %v295_v31 = vmax.f32 %v263_v16, 0.0  ;;  %v267_v32 = vadd.f32 %v468_v1, %v231_v17  ;;  %v235_v33 = vmul.f32 %v458_v0, %v199_v22 }
  0x20   : > { %321 = vst [vmem:[%s491_s25 + $0x58] sm:$0xff] %v289_v7  ;;  %v296_v35 = vmax.f32 %v264_v20, 0.0  ;;  %v268_v36 = vadd.f32 %v468_v1, %v232_v21  ;;  %v236_v37 = vmul.f32 %v458_v0, %v200_v26  ;;  %v297_v39 = vmax.f32 %v265_v24, 0.0 }
  0x21   : > { %322 = vst [vmem:[%s491_s25 + $0x60] sm:$0xff] %v290_v11  ;;  %v269_v40 = vadd.f32 %v468_v1, %v233_v25  ;;  %v237_v41 = vmul.f32 %v458_v0, %v201_v30  ;;  %v298_v43 = vmax.f32 %v266_v28, 0.0  ;;  %v270_v44 = vadd.f32 %v468_v1, %v234_v29 }
  0x22   : > { %323 = vst [vmem:[%s491_s25 + $0x68] sm:$0xff] %v291_v15  ;;  %v238_v45 = vmul.f32 %v458_v0, %v202_v34  ;;  %v299_v47 = vmax.f32 %v267_v32, 0.0  ;;  %v271_v48 = vadd.f32 %v468_v1, %v235_v33  ;;  %v239_v49 = vmul.f32 %v458_v0, %v203_v38 }
  0x23   : > { %324 = vst [vmem:[%s491_s25 + $0x70] sm:$0xff] %v292_v19  ;;  %v300_v50 = vmax.f32 %v268_v36, 0.0  ;;  %v272_v51 = vadd.f32 %v468_v1, %v236_v37  ;;  %v240_v52 = vmul.f32 %v458_v0, %v204_v42  ;;  %v301_v53 = vmax.f32 %v269_v40, 0.0 }
  0x24   : > { %325 = vst [vmem:[%s491_s25 + $0x78] sm:$0xff] %v293_v23  ;;  %v273_v54 = vadd.f32 %v468_v1, %v237_v41  ;;  %v241_v55 = vmul.f32 %v458_v0, %v205_v46  ;;  %v302_v56 = vmax.f32 %v270_v44, 0.0  ;;  %v274_v57 = vadd.f32 %v468_v1, %v238_v45 }
  0x25   : > { %326 = vst [vmem:[%s491_s25 + $0x80] sm:$0xff] %v294_v27  ;;  %v303_v58 = vmax.f32 %v271_v48, 0.0  ;;  %v275_v59 = vadd.f32 %v468_v1, %v239_v49  ;;  %v304_v60 = vmax.f32 %v272_v51, 0.0  ;;  %v276_v61 = vadd.f32 %v468_v1, %v240_v52 }
  0x26   : > { %327 = vst [vmem:[%s491_s25 + $0x88] sm:$0xff] %v295_v31  ;;  %v305_v0 = vmax.f32 %v273_v54, 0.0  ;;  %v277_v62 = vadd.f32 %v468_v1, %v241_v55  ;;  %v306_v63 = vmax.f32 %v274_v57, 0.0 }
  0x27   : > { %328 = vst [vmem:[%s491_s25 + $0x90] sm:$0xff] %v296_v35  ;;  %v307_v2 = vmax.f32 %v275_v59, 0.0  ;;  %v308_v3 = vmax.f32 %v276_v61, 0.0 }
  0x28   : > { %329 = vst [vmem:[%s491_s25 + $0x98] sm:$0xff] %v297_v39  ;;  %v309_v4 = vmax.f32 %v277_v62, 0.0 }
  0x29   : > { %330 = vst [vmem:[%s491_s25 + $0xa0] sm:$0xff] %v298_v43 }
  0x2a   : > { %331 = vst [vmem:[%s491_s25 + $0xa8] sm:$0xff] %v299_v47 }
  0x2b   : > { %332 = vst [vmem:[%s491_s25 + $0xb0] sm:$0xff] %v300_v50 }
  0x2c   : > { %333 = vst [vmem:[%s491_s25 + $0xb8] sm:$0xff] %v301_v53 }
  0x2d   : > { %334 = vst [vmem:[%s491_s25 + $0xc0] sm:$0xff] %v302_v56 }
  0x2e   : > { %335 = vst [vmem:[%s491_s25 + $0xc8] sm:$0xff] %v303_v58 }
  0x2f   : > { %336 = vst [vmem:[%s491_s25 + $0xd0] sm:$0xff] %v304_v60 }
  0x30   : > { %337 = vst [vmem:[%s491_s25 + $0xd8] sm:$0xff] %v305_v0 }
  0x31   : > { %338 = vst [vmem:[%s491_s25 + $0xe0] sm:$0xff] %v306_v63 }
  0x32   : > { %339 = vst [vmem:[%s491_s25 + $0xe8] sm:$0xff] %v307_v2 }
  0x33   : > { %340 = vst [vmem:[%s491_s25 + $0xf0] sm:$0xff] %v308_v3 }
  0x34   : > { %341 = vst [vmem:[%s491_s25 + $0xf8] sm:$0xff] %v309_v4 }
  0x35 PF: > { %s13_s12 = sadd.s32 1, %s425_s12  }
  0x36   : > { %p10_p4 = scmp.ge.s32.totalorder %s13_s12, 4  }
  0x38   :  { %12 = sbr.rel (!%p10_p4) target bundleno = 1 (0x1), region = 62 }

// kernel: _forward_impl.2
= control target key start
LH: loop header
LB: loop body
LE: loop exit
PB: predicated region body
PF: predicated region fallthrough
CT: control target
= control target key end

     0   :  { %s924_s15 = smov 0   ;;  %s1147_s0 = inlined_call_operand.vmem [shape: bf16[512,36], index: 0, kind: input, shape index: {}]   ;;  %s1148_s1 = inlined_call_operand.vmem [shape: bf16[36,128], index: 1, kind: input, shape index: {}]   ;;  %s1149_s2 = inlined_call_operand.vmem [shape: f32[512,128], index: 2, kind: output, shape index: {0}]   ;;  %s1150_s3 = inlined_call_operand.vmem [shape: f32[2,8,128], index: 3, kind: output, shape index: {1}]   ;;  %s1151_s4 = inlined_call_operand.vmem [shape: f32[2,8,128], index: 4, kind: output, shape index: {2}]  }
   0x1 LB: > { %s930_s16 = sadd.s32 4294967295, %s897_s15   ;;  %p759_p0 = scmp.ge.s32.totalorder %s897_s15, 1  ;;  %s897_s15 = sphi %s924_s15, %s15_s15  }
   0x2   : > { %p168_p1 = scmp.lt.s32.totalorder %s897_s15, 3 }
   0x4   : > { %p169_p2 = pnand %p759_p0, %p168_p1 }
   0x5   : > { %s760_s19 = sshll.u32 (!%p169_p2), %s930_s16, 5  ;;  %p214_p4 = scmp.lt.s32.totalorder (!%p169_p2), %s930_s16, 1 }
   0x6   : > { %172 = sbr.rel (%p169_p2) target bundleno = 275 (0x113), region = 28  ;;  %p203_p3 = scmp.lt.s32.totalorder (!%p169_p2), %s760_s19, 63 }
   0xb   : > { %v259_v0 = vld [vmem:[%s1148_s1 + $0x10] sm:$0x3]  ;;  %vm404_vm0 = vcmask 1041408   ;;  %s1153_s19 = smov (!%p203_p3, %s760_s19), 63  ;;  %v873_v4 = vld [vmem:[%s1148_s1 + $0x8] sm:$0xff]  ;;  %v872_v5 = vld [vmem:[%s1148_s1] sm:$0xff] }
   0xc   : > { %v349_v1 = vunpack.c.l.b16 %v259_v0  ;;  %s761_s22 = sshll.u32 %s1153_s19, 2  ;;  %vm355_vm1 = vcmask 293888   ;;  %s763_s28 = sshll.u32 %s1153_s19, 3 }
   0xd   : > { %s950_s27 = scalar_lea.vmem %s1147_s0, %s761_s22  ;;  %s988_s5 = scalar_lea.vmem %s1149_s2, %s763_s28 }
   0xe   : > { %v352_v2 = vpack.c.b16 %v349_v1, %v349_v1  ;;  %v856_v6 = vld [vmem:[%s950_s27] sm:$0xff]  ;;  %v857_v10 = vld [vmem:[%s950_s27 + $0x8] sm:$0xff]  ;;  %v858_v14 = vld [vmem:[%s950_s27 + $0x10] sm:$0xff]  ;;  %s1155_s16 = smov (!%p214_p4, %s930_s16), 1 }
   0xf   : > { %v860_v7 = vld [vmem:[%s950_s27 + $0x20] sm:$0xff]  ;;  %v861_v11 = vld [vmem:[%s950_s27 + $0x28] sm:$0xff]  ;;  %v862_v15 = vld [vmem:[%s950_s27 + $0x30] sm:$0xff]  ;;  %s764_s6 = sshll.u32 %s1155_s16, 3 }
  0x10   : > { %v406_v3 = vsel %vm404_vm0, %v352_v2, 0  ;;  %v864_v8 = vld [vmem:[%s950_s27 + $0x40] sm:$0xff]  ;;  %v865_v12 = vld [vmem:[%s950_s27 + $0x48] sm:$0xff]  ;;  %v866_v16 = vld [vmem:[%s950_s27 + $0x50] sm:$0xff]  ;;  %s217_s9 = scalar_lea.vmem %s1150_s3, %s764_s6  ;;  %s221_s12 = scalar_lea.vmem %s1151_s4, %s764_s6 }
  0x11   : > { %413 = vmatpush.bf16.msra.mxu0 %v406_v3  ;;  %874 = vmatpush.bf16.msra.mxu1 %v406_v3  ;;  %v868_v9 = vld [vmem:[%s950_s27 + $0x60] sm:$0xff]  ;;  %v869_v13 = vld [vmem:[%s950_s27 + $0x68] sm:$0xff]  ;;  %v870_v17 = vld [vmem:[%s950_s27 + $0x70] sm:$0xff] }
  0x12   : > { %875 = vmatpush.bf16.msra.mxu2 %v406_v3  ;;  %876 = vmatpush.bf16.msra.mxu3 %v406_v3  ;;  %v859_v18 = vld [vmem:[%s950_s27 + $0x18] sm:$0xff] }
  0x13   : > { %v863_v19 = vld [vmem:[%s950_s27 + $0x38] sm:$0xff] }
  0x14   : > { %v867_v20 = vld [vmem:[%s950_s27 + $0x58] sm:$0xff] }
  0x15   : > { %414 = vmatpush.bf16.msra.mxu0 %v873_v4  ;;  %877 = vmatpush.bf16.msra.mxu1 %v873_v4  ;;  %v871_v21 = vld [vmem:[%s950_s27 + $0x78] sm:$0xff] }
  0x16   : > { %878 = vmatpush.bf16.msra.mxu2 %v873_v4  ;;  %879 = vmatpush.bf16.msra.mxu3 %v873_v4 }
  0x19   : > { %415 = vmatpush.bf16.msra.mxu0 %v872_v5  ;;  %880 = vmatpush.bf16.msra.mxu1 %v872_v5 }
  0x1a   : > { %881 = vmatpush.bf16.msra.mxu2 %v872_v5  ;;  %882 = vmatpush.bf16.msra.mxu3 %v872_v5 }
  0x1c   : > { %838 = vmatmul.msk.bf16.vlgmr.msra.gmra.mxu0 %vm355_vm1, %v856_v6  ;;  %842 = vmatmul.msk.bf16.vlgmr.msra.gmra.mxu1 %vm355_vm1, %v860_v7 }
  0x1d   : > { %846 = vmatmul.msk.bf16.vlgmr.msra.gmra.mxu2 %vm355_vm1, %v864_v8  ;;  %850 = vmatmul.msk.bf16.vlgmr.msra.gmra.mxu3 %vm355_vm1, %v868_v9 }
  0x2c   : > { %839 = vmatmul.msk.bf16.gmra.mxu0 %vm355_vm1, %v857_v10  ;;  %843 = vmatmul.msk.bf16.gmra.mxu1 %vm355_vm1, %v861_v11 }
  0x2d   : > { %847 = vmatmul.msk.bf16.gmra.mxu2 %vm355_vm1, %v865_v12  ;;  %851 = vmatmul.msk.bf16.gmra.mxu3 %vm355_vm1, %v869_v13 }
  0x3c   : > { %840 = vmatmul.msk.bf16.gmra.mxu0 %vm355_vm1, %v858_v14  ;;  %844 = vmatmul.msk.bf16.gmra.mxu1 %vm355_vm1, %v862_v15 }
  0x3d   : > { %848 = vmatmul.msk.bf16.gmra.mxu2 %vm355_vm1, %v866_v16  ;;  %852 = vmatmul.msk.bf16.gmra.mxu3 %vm355_vm1, %v870_v17 }
  0x4c   : > { %841 = vmatmul.msk.bf16.gmra.mxu0 %vm355_vm1, %v859_v18  ;;  %845 = vmatmul.msk.bf16.gmra.mxu1 %vm355_vm1, %v863_v19 }
  0x4d   : > { %849 = vmatmul.msk.bf16.gmra.mxu2 %vm355_vm1, %v867_v20  ;;  %853 = vmatmul.msk.bf16.gmra.mxu3 %vm355_vm1, %v871_v21 }
  0x99   : > { %v417_v22 = vpop.f32.mrf.mxu0  ;;  %v990_v23 = vpop.f32.mrf.mxu1 }
  0x9a   : > { %497 = vst [vmem:[%s988_s5] sm:$0xff] %v417_v22  ;;  %v566_v45 = vmul.f32 %v417_v22, %v417_v22  ;;  %v574_v9 = vmul.f32 %v990_v23, %v990_v23 }
  0x9b   : > { %505 = vst [vmem:[%s988_s5 + $0x40] sm:$0xff] %v990_v23 }
  0xa0   : > { %v995_v24 = vpop.f32.mrf.mxu2  ;;  %v1002_v27 = vpop.f32.mrf.mxu3 }
  0xa1   : > { %v419_v25 = vpop.f32.mrf.mxu0  ;;  %v997_v26 = vpop.f32.mrf.mxu1  ;;  %513 = vst [vmem:[%s988_s5 + $0x80] sm:$0xff] %v995_v24 }
  0xa2   : > { %498 = vst [vmem:[%s988_s5 + $0x8] sm:$0xff] %v419_v25  ;;  %v567_v44 = vmul.f32 %v419_v25, %v419_v25  ;;  %v529_v46 = vadd.f32 %v419_v25, %v417_v22  ;;  %v575_v12 = vmul.f32 %v997_v26, %v997_v26 }
  0xa3   : > { %506 = vst [vmem:[%s988_s5 + $0x48] sm:$0xff] %v997_v26 }
  0xa4   : > { %521 = vst [vmem:[%s988_s5 + $0xc0] sm:$0xff] %v1002_v27  ;;  %v598_v48 = vadd.f32 %v567_v44, %v566_v45 }
  0xa8   : > { %v1008_v28 = vpop.f32.mrf.mxu2  ;;  %v1015_v31 = vpop.f32.mrf.mxu3 }
  0xa9   : > { %v422_v29 = vpop.f32.mrf.mxu0  ;;  %v1010_v30 = vpop.f32.mrf.mxu1  ;;  %514 = vst [vmem:[%s988_s5 + $0x88] sm:$0xff] %v1008_v28 }
  0xaa   : > { %499 = vst [vmem:[%s988_s5 + $0x10] sm:$0xff] %v422_v29  ;;  %v568_v47 = vmul.f32 %v422_v29, %v422_v29  ;;  %v530_v49 = vadd.f32 %v529_v46, %v422_v29  ;;  %v576_v15 = vmul.f32 %v1010_v30, %v1010_v30 }
  0xab   : > { %507 = vst [vmem:[%s988_s5 + $0x50] sm:$0xff] %v1010_v30 }
  0xac   : > { %522 = vst [vmem:[%s988_s5 + $0xc8] sm:$0xff] %v1015_v31  ;;  %v599_v54 = vadd.f32 %v598_v48, %v568_v47  ;;  %v582_v47 = vmul.f32 %v995_v24, %v995_v24 }
  0xb0   : > { %v1021_v32 = vpop.f32.mrf.mxu2  ;;  %v1028_v35 = vpop.f32.mrf.mxu3 }
  0xb1   : > { %v424_v33 = vpop.f32.mrf.mxu0  ;;  %v1023_v34 = vpop.f32.mrf.mxu1  ;;  %515 = vst [vmem:[%s988_s5 + $0x90] sm:$0xff] %v1021_v32 }
  0xb2   : > { %500 = vst [vmem:[%s988_s5 + $0x18] sm:$0xff] %v424_v33  ;;  %v569_v50 = vmul.f32 %v424_v33, %v424_v33  ;;  %v531_v55 = vadd.f32 %v530_v49, %v424_v33  ;;  %v577_v19 = vmul.f32 %v1023_v34, %v1023_v34 }
  0xb3   : > { %508 = vst [vmem:[%s988_s5 + $0x58] sm:$0xff] %v1023_v34 }
  0xb4   : > { %523 = vst [vmem:[%s988_s5 + $0xd0] sm:$0xff] %v1028_v35  ;;  %v600_v58 = vadd.f32 %v599_v54, %v569_v50 }
  0xb8   : > { %v1034_v36 = vpop.f32.mrf.mxu2  ;;  %v1041_v39 = vpop.f32.mrf.mxu3 }
  0xb9   : > { %v427_v37 = vpop.f32.mrf.mxu0  ;;  %v1036_v38 = vpop.f32.mrf.mxu1  ;;  %516 = vst [vmem:[%s988_s5 + $0x98] sm:$0xff] %v1034_v36 }
  0xba   : > { %501 = vst [vmem:[%s988_s5 + $0x20] sm:$0xff] %v427_v37  ;;  %v570_v56 = vmul.f32 %v427_v37, %v427_v37  ;;  %v532_v59 = vadd.f32 %v531_v55, %v427_v37  ;;  %v585_v55 = vmul.f32 %v1034_v36, %v1034_v36 }
  0xbb   : > { %509 = vst [vmem:[%s988_s5 + $0x60] sm:$0xff] %v1036_v38 }
  0xbc   : > { %524 = vst [vmem:[%s988_s5 + $0xd8] sm:$0xff] %v1041_v39  ;;  %v601_v61 = vadd.f32 %v600_v58, %v570_v56 }
  0xc0   : > { %v1047_v40 = vpop.f32.mrf.mxu2  ;;  %v1054_v43 = vpop.f32.mrf.mxu3 }
  0xc1   : > { %v429_v41 = vpop.f32.mrf.mxu0  ;;  %v1049_v42 = vpop.f32.mrf.mxu1  ;;  %517 = vst [vmem:[%s988_s5 + $0xa0] sm:$0xff] %v1047_v40 }
  0xc2   : > { %502 = vst [vmem:[%s988_s5 + $0x28] sm:$0xff] %v429_v41  ;;  %v571_v60 = vmul.f32 %v429_v41, %v429_v41  ;;  %v533_v62 = vadd.f32 %v532_v59, %v429_v41  ;;  %v579_v29 = vmul.f32 %v1049_v42, %v1049_v42 }
  0xc3   : > { %510 = vst [vmem:[%s988_s5 + $0x68] sm:$0xff] %v1049_v42 }
  0xc4   : > { %525 = vst [vmem:[%s988_s5 + $0xe0] sm:$0xff] %v1054_v43  ;;  %v602_v0 = vadd.f32 %v601_v61, %v571_v60 }
  0xc8   : > { %v1060_v51 = vpop.f32.mrf.mxu2  ;;  %v1065_v57 = vpop.f32.mrf.mxu3 }
  0xc9   : > { %v432_v52 = vpop.f32.mrf.mxu0  ;;  %v452_v53 = vpop.f32.mrf.mxu1  ;;  %518 = vst [vmem:[%s988_s5 + $0xa8] sm:$0xff] %v1060_v51  ;;  %v587_v61 = vmul.f32 %v1060_v51, %v1060_v51 }
  0xca   : > { %503 = vst [vmem:[%s988_s5 + $0x30] sm:$0xff] %v432_v52  ;;  %v572_v63 = vmul.f32 %v432_v52, %v432_v52  ;;  %v534_v1 = vadd.f32 %v533_v62, %v432_v52  ;;  %v580_v41 = vmul.f32 %v452_v53, %v452_v53 }
  0xcb   : > { %511 = vst [vmem:[%s988_s5 + $0x70] sm:$0xff] %v452_v53 }
  0xcc   : > { %526 = vst [vmem:[%s988_s5 + $0xe8] sm:$0xff] %v1065_v57  ;;  %v603_v5 = vadd.f32 %v602_v0, %v572_v63 }
  0xd0   : > { %v472_v2 = vpop.f32.mrf.mxu2  ;;  %v1072_v8 = vpop.f32.mrf.mxu3 }
  0xd1   : > { %v434_v3 = vpop.f32.mrf.mxu0  ;;  %v454_v4 = vpop.f32.mrf.mxu1  ;;  %519 = vst [vmem:[%s988_s5 + $0xb0] sm:$0xff] %v472_v2  ;;  %v588_v0 = vmul.f32 %v472_v2, %v472_v2 }
  0xd2   : > { %504 = vst [vmem:[%s988_s5 + $0x38] sm:$0xff] %v434_v3  ;;  %v535_v6 = vadd.f32 %v534_v1, %v434_v3  ;;  %v573_v7 = vmul.f32 %v434_v3, %v434_v3 }
  0xd3   : > { %512 = vst [vmem:[%s988_s5 + $0x78] sm:$0xff] %v454_v4 }
  0xd4   : > { %v536_v10 = vadd.f32 %v535_v6, %v990_v23  ;;  %v604_v11 = vadd.f32 %v603_v5, %v573_v7  ;;  %527 = vst [vmem:[%s988_s5 + $0xf0] sm:$0xff] %v1072_v8  ;;  %v578_v23 = vmul.f32 %v1036_v38, %v1036_v38 }
  0xd6   : > { %v537_v13 = vadd.f32 %v536_v10, %v997_v26  ;;  %v605_v14 = vadd.f32 %v604_v11, %v574_v9  ;;  %v593_v11 = vmul.f32 %v1041_v39, %v1041_v39 }
  0xd8   : > { %v538_v16 = vadd.f32 %v537_v13, %v1010_v30  ;;  %v606_v17 = vadd.f32 %v605_v14, %v575_v12  ;;  %v474_v18 = vpop.f32.mrf.mxu2  ;;  %v494_v22 = vpop.f32.mrf.mxu3  ;;  %v594_v13 = vmul.f32 %v1054_v43, %v1054_v43 }
  0xd9   : > { %520 = vst [vmem:[%s988_s5 + $0xb8] sm:$0xff] %v474_v18 }
  0xda   : > { %v607_v20 = vadd.f32 %v606_v17, %v576_v15  ;;  %v539_v21 = vadd.f32 %v538_v16, %v1023_v34  ;;  %528 = vst [vmem:[%s988_s5 + $0xf8] sm:$0xff] %v494_v22  ;;  %v581_v34 = vmul.f32 %v454_v4, %v454_v4  ;;  %v595_v16 = vmul.f32 %v1065_v57, %v1065_v57 }
  0xdc   : > { %v540_v25 = vadd.f32 %v539_v21, %v1036_v38  ;;  %v608_v26 = vadd.f32 %v607_v20, %v577_v19  ;;  %v583_v38 = vmul.f32 %v1008_v28, %v1008_v28  ;;  %v596_v19 = vmul.f32 %v1072_v8, %v1072_v8 }
  0xdd   : > { %v597_v21 = vmul.f32 %v494_v22, %v494_v22 }
  0xde   : > { %v541_v30 = vadd.f32 %v540_v25, %v1049_v42  ;;  %v609_v33 = vadd.f32 %v608_v26, %v578_v23  ;;  %v584_v42 = vmul.f32 %v1021_v32, %v1021_v32 }
  0xe0   : > { %v542_v37 = vadd.f32 %v541_v30, %v452_v53  ;;  %v610_v44 = vadd.f32 %v609_v33, %v579_v29 }
  0xe2   : > { %v611_v45 = vadd.f32 %v610_v44, %v580_v41  ;;  %v543_v46 = vadd.f32 %v542_v37, %v454_v4  ;;  %v589_v4 = vmul.f32 %v474_v18, %v474_v18 }
  0xe4   : > { %v544_v48 = vadd.f32 %v543_v46, %v995_v24  ;;  %v612_v49 = vadd.f32 %v611_v45, %v581_v34  ;;  %v586_v24 = vmul.f32 %v1047_v40, %v1047_v40 }
  0xe6   : > { %v545_v50 = vadd.f32 %v544_v48, %v1008_v28  ;;  %v613_v52 = vadd.f32 %v612_v49, %v582_v47 }
  0xe8   : > { %v546_v53 = vadd.f32 %v545_v50, %v1021_v32  ;;  %v614_v54 = vadd.f32 %v613_v52, %v583_v38 }
  0xea   : > { %v615_v56 = vadd.f32 %v614_v54, %v584_v42  ;;  %v547_v58 = vadd.f32 %v546_v53, %v1034_v36  ;;  %v590_v36 = vmul.f32 %v1002_v27, %v1002_v27 }
  0xec   : > { %v548_v59 = vadd.f32 %v547_v58, %v1047_v40  ;;  %v616_v60 = vadd.f32 %v615_v56, %v585_v55  ;;  %v591_v40 = vmul.f32 %v1015_v31, %v1015_v31 }
  0xee   : > { %v549_v28 = vadd.f32 %v548_v59, %v1060_v51  ;;  %v617_v62 = vadd.f32 %v616_v60, %v586_v24  ;;  %v592_v51 = vmul.f32 %v1028_v35, %v1028_v35 }
  0xf0   : > { %v618_v32 = vadd.f32 %v617_v62, %v587_v61  ;;  %v550_v63 = vadd.f32 %v549_v28, %v472_v2 }
  0xf2   : > { %v619_v1 = vadd.f32 %v618_v32, %v588_v0  ;;  %v551_v3 = vadd.f32 %v550_v63, %v474_v18 }
  0xf4   : > { %v552_v5 = vadd.f32 %v551_v3, %v1002_v27  ;;  %v620_v6 = vadd.f32 %v619_v1, %v589_v4 }
  0xf6   : > { %v553_v7 = vadd.f32 %v552_v5, %v1015_v31  ;;  %v621_v9 = vadd.f32 %v620_v6, %v590_v36 }
  0xf8   : > { %v554_v2 = vadd.f32 %v553_v7, %v1028_v35  ;;  %v622_v10 = vadd.f32 %v621_v9, %v591_v40 }
  0xfa   : > { %v623_v12 = vadd.f32 %v622_v10, %v592_v51  ;;  %v555_v27 = vadd.f32 %v554_v2, %v1041_v39 }
  0xfc   : > { %v556_v31 = vadd.f32 %v555_v27, %v1054_v43  ;;  %v624_v14 = vadd.f32 %v623_v12, %v593_v11 }
  0xfe   : > { %v557_v15 = vadd.f32 %v556_v31, %v1065_v57  ;;  %v625_v35 = vadd.f32 %v624_v14, %v594_v13 }
 0x100   : > { %v626_v17 = vadd.f32 %v625_v35, %v595_v16  ;;  %v558_v18 = vadd.f32 %v557_v15, %v1072_v8 }
 0x102   : > { %v627_v39 = vadd.f32 %v626_v17, %v596_v19  ;;  %v559_v20 = vadd.f32 %v558_v18, %v494_v22 }
 0x104   : > { %v560_v23 = vrot.slane %v559_v20, 4  ;;  %v628_v25 = vadd.f32 %v627_v39, %v597_v21 }
 0x106   : > { %v561_v43 = vadd.f32 %v560_v23, %v559_v20  ;;  %v629_v26 = vrot.slane %v628_v25, 4 }
 0x108   : > { %v562_v29 = vrot.slane %v561_v43, 2  ;;  %v630_v30 = vadd.f32 %v629_v26, %v628_v25 }
 0x10a   : > { %v563_v57 = vadd.f32 %v562_v29, %v561_v43  ;;  %v631_v33 = vrot.slane %v630_v30, 2 }
 0x10c   : > { %v564_v37 = vrot.slane %v563_v57, 1  ;;  %v632_v41 = vadd.f32 %v631_v33, %v630_v30 }
 0x10e   : > { %v565_v8 = vadd.f32 %v564_v37, %v563_v57  ;;  %v633_v44 = vrot.slane %v632_v41, 1 }
 0x110   : > { %v634_v22 = vadd.f32 %v633_v44, %v632_v41  ;;  %635 = vst [vmem:[%s217_s9] sm:$0xff] %v565_v8 }
 0x112   : > { %636 = vst [vmem:[%s221_s12] sm:$0xff] %v634_v22 }
 0x113 PF: > { %s15_s15 = sadd.s32 1, %s897_s15  }
 0x114   : > { %p12_p5 = scmp.ge.s32.totalorder %s15_s15, 4  }
 0x116   :  { %14 = sbr.rel (!%p12_p5) target bundleno = 1 (0x1), region = 82 }

</bundles_post_ra>
